<compile_context>
chip_gen: v6e
topology: v6e:2x2x1
jax: 0.10.0
libtpu: 0.0.40
codegen_flags: <defaults>
</compile_context>

<pallas_src>
import jax
import jax.numpy as jnp
from jax.experimental import pallas as pl
from jax.experimental.pallas import tpu as pltpu

ACTION_SIZE = 37
PAD = 128  # lane-aligned padded feature width


# ---------------------------------------------------------------------------
# Kernel
# ---------------------------------------------------------------------------
def dueling_dqn_kernel(x_ref, w_ref, b_ref, out_ref):
    A = ACTION_SIZE
    x = x_ref[...]                                             # (B, 128) bf16

    # stage 1: linear1 + ReLU (padded columns stay exactly zero)
    h = jnp.dot(x, w_ref[:, 0:PAD], preferred_element_type=jnp.float32)
    h = jnp.maximum(h + b_ref[:, 0:PAD], 0.0)                  # (B, 128) f32

    # stage 2: fused [advantage1 | value1] + ReLU
    av = jnp.dot(h.astype(jnp.bfloat16), w_ref[:, PAD:2 * PAD],
                 preferred_element_type=jnp.float32)
    av = jnp.maximum(av + b_ref[:, PAD:2 * PAD], 0.0)          # (B, 128) f32
    # av[:, 0:37] = a (advantage branch), av[:, 37:74] = v (value branch)

    # stage 3: fused block-diagonal [advantage2 | value2]
    out2 = jnp.dot(av.astype(jnp.bfloat16), w_ref[:, 2 * PAD:3 * PAD],
                   preferred_element_type=jnp.float32) + b_ref[:, 2 * PAD:3 * PAD]

    adv = out2[:, 0:A]          # (B, 37)
    val = out2[:, A:A + 1]      # (B, 1)

    # Q = V + A - mean(A)   (mean over the ENTIRE advantage tensor, as in torch)
    out_ref[...] = val + adv - jnp.mean(adv)


# ---------------------------------------------------------------------------
# Wrapper / packing
# ---------------------------------------------------------------------------
def pack_params(params):
    """Pack the 10 linear params into one bf16 weight slab and one f32 bias slab."""
    (w1, b1, wa1, ba1, wa2, ba2, wv1, bv1, wv2, bv2) = params
    A = ACTION_SIZE

    # block 0: linear1, padded to (128, 128)
    W1 = jnp.zeros((PAD, PAD), jnp.float32).at[:A, :A].set(w1)
    B1 = jnp.zeros((1, PAD), jnp.float32).at[:, :A].set(b1)

    # block 1: [advantage1 | value1] side by side, padded to (128, 128)
    Wav = (jnp.zeros((PAD, PAD), jnp.float32)
           .at[:A, :A].set(wa1)
           .at[:A, A:2 * A].set(wv1))
    Bav = (jnp.zeros((1, PAD), jnp.float32)
           .at[:, :A].set(ba1)
           .at[:, A:2 * A].set(bv1))

    # block 2: block-diagonal [[advantage2, 0], [0, value2]], padded to (128, 128)
    W2 = (jnp.zeros((PAD, PAD), jnp.float32)
          .at[:A, :A].set(wa2)
          .at[A:2 * A, A:A + 1].set(wv2))
    B2 = (jnp.zeros((1, PAD), jnp.float32)
          .at[:, :A].set(ba2)
          .at[:, A:A + 1].set(bv2))

    w_slab = jnp.concatenate([W1, Wav, W2], axis=1).astype(jnp.bfloat16)  # (128, 384)
    b_slab = jnp.concatenate([B1, Bav, B2], axis=1)                        # (1, 384) f32
    return w_slab, b_slab


def dueling_dqn_forward(x, packed):
    w_slab, b_slab = packed
    B = x.shape[0]
    # zero-pad features 37 -> 128 (lane-aligned) and cast matmul input to bf16
    x_pad = jnp.pad(x, ((0, 0), (0, PAD - ACTION_SIZE))).astype(jnp.bfloat16)

    vmem = pl.BlockSpec(memory_space=pltpu.MemorySpace.VMEM)
    return pl.pallas_call(
        dueling_dqn_kernel,
        out_shape=jax.ShapeDtypeStruct((B, ACTION_SIZE), jnp.float32),
        in_specs=[vmem, vmem, vmem],
        out_specs=vmem,
    )(x_pad, w_slab, b_slab)


# ---------------------------------------------------------------------------
# Init + reference
# ---------------------------------------------------------------------------
def init_params(key):
    """PyTorch-Linear-style init U(-1/sqrt(fan_in), 1/sqrt(fan_in)).
    Weights stored transposed relative to torch: (in_features, out_features)."""
    def linear(key, fan_in, fan_out):
        kw, kb = jax.random.split(key)
        bound = 1.0 / jnp.sqrt(fan_in)
        w = jax.random.uniform(kw, (fan_in, fan_out), jnp.float32, -bound, bound)
        b = jax.random.uniform(kb, (1, fan_out), jnp.float32, -bound, bound)
        return w, b

    keys = jax.random.split(key, 5)
    w1, b1 = linear(keys[0], ACTION_SIZE, ACTION_SIZE)     # linear1
    wa1, ba1 = linear(keys[1], ACTION_SIZE, ACTION_SIZE)   # advantage1
    wa2, ba2 = linear(keys[2], ACTION_SIZE, ACTION_SIZE)   # advantage2
    wv1, bv1 = linear(keys[3], ACTION_SIZE, ACTION_SIZE)   # value1
    wv2, bv2 = linear(keys[4], ACTION_SIZE, 1)             # value2
    return (w1, b1, wa1, ba1, wa2, ba2, wv1, bv1, wv2, bv2)


def reference_forward(x, params):
    """Same math as the PyTorch module, mirroring the kernel's bf16 matmul
    operands with f32 accumulation (bias/ReLU/mean in f32)."""
    (w1, b1, wa1, ba1, wa2, ba2, wv1, bv1, wv2, bv2) = params

    def mm(a, w):
        return jnp.dot(a.astype(jnp.bfloat16), w.astype(jnp.bfloat16),
                       preferred_element_type=jnp.float32)

    h = jnp.maximum(mm(x, w1) + b1, 0.0)
    a = jnp.maximum(mm(h, wa1) + ba1, 0.0)
    adv = mm(a, wa2) + ba2
    v = jnp.maximum(mm(h, wv1) + bv1, 0.0)
    val = mm(v, wv2) + bv2
    return val + adv - jnp.mean(adv)


if __name__ == "__main__":
    key = jax.random.PRNGKey(0)
    k_params, k_x = jax.random.split(key)

    params = init_params(k_params)
    packed = pack_params(params)

    batch = 8
    x = jax.random.normal(k_x, (batch, ACTION_SIZE), jnp.float32)

    out = dueling_dqn_forward(x, packed)
    out = jax.block_until_ready(out)

    ref = reference_forward(x, params)
    assert out.shape == (batch, ACTION_SIZE)
    assert jnp.allclose(out, ref, atol=1e-4, rtol=1e-4), "mismatch vs reference"

    print("KERNEL_OK")
</pallas_src>

<mosaic_0001>
module attributes {stable_mosaic.version = 11 : i64} {
  func.func @dueling_dqn_kernel(%arg0: memref<8x128xbf16, #tpu.memory_space<vmem>>, %arg1: memref<128x384xbf16, #tpu.memory_space<vmem>>, %arg2: memref<1x384xf32, #tpu.memory_space<vmem>>, %arg3: memref<8x37xf32, #tpu.memory_space<vmem>>) attributes {dimension_semantics = [], scalar_prefetch = 0 : i64, scratch_operands = 0 : i64, tpu.core_type = #tpu.core_type<tc>} {
    %c0 = arith.constant 0 : index
    %c0_0 = arith.constant 0 : index
    %0 = vector.load %arg0[%c0, %c0_0] : memref<8x128xbf16, #tpu.memory_space<vmem>>, vector<8x128xbf16>
    %c0_1 = arith.constant 0 : index
    %c0_2 = arith.constant 0 : index
    %1 = vector.load %arg1[%c0_1, %c0_2] : memref<128x384xbf16, #tpu.memory_space<vmem>>, vector<128x128xbf16>
    %cst = arith.constant dense<0.000000e+00> : vector<8x128xf32>
    %2 = tpu.matmul %0, %1, %cst {dimension_numbers = #tpu.dot_dimension_numbers<[1], [0], [0], [1], [0, 0, 1, 1], [], []>} : vector<8x128xbf16>, vector<128x128xbf16>, vector<8x128xf32> -> vector<8x128xf32>
    %c0_3 = arith.constant 0 : index
    %c0_4 = arith.constant 0 : index
    %3 = vector.load %arg2[%c0_3, %c0_4] : memref<1x384xf32, #tpu.memory_space<vmem>>, vector<1x128xf32>
    %4 = vector.broadcast %3 : vector<1x128xf32> to vector<8x128xf32>
    %5 = arith.addf %2, %4 : vector<8x128xf32>
    %cst_5 = arith.constant 0.000000e+00 : f32
    %6 = vector.broadcast %cst_5 : f32 to vector<8x128xf32>
    %7 = arith.maximumf %5, %6 : vector<8x128xf32>
    %8 = arith.truncf %7 : vector<8x128xf32> to vector<8x128xbf16>
    %c0_6 = arith.constant 0 : index
    %c128 = arith.constant 128 : index
    %9 = vector.load %arg1[%c0_6, %c128] : memref<128x384xbf16, #tpu.memory_space<vmem>>, vector<128x128xbf16>
    %cst_7 = arith.constant dense<0.000000e+00> : vector<8x128xf32>
    %10 = tpu.matmul %8, %9, %cst_7 {dimension_numbers = #tpu.dot_dimension_numbers<[1], [0], [0], [1], [0, 0, 1, 1], [], []>} : vector<8x128xbf16>, vector<128x128xbf16>, vector<8x128xf32> -> vector<8x128xf32>
    %c0_8 = arith.constant 0 : index
    %c128_9 = arith.constant 128 : index
    %11 = vector.load %arg2[%c0_8, %c128_9] : memref<1x384xf32, #tpu.memory_space<vmem>>, vector<1x128xf32>
    %12 = vector.broadcast %11 : vector<1x128xf32> to vector<8x128xf32>
    %13 = arith.addf %10, %12 : vector<8x128xf32>
    %cst_10 = arith.constant 0.000000e+00 : f32
    %14 = vector.broadcast %cst_10 : f32 to vector<8x128xf32>
    %15 = arith.maximumf %13, %14 : vector<8x128xf32>
    %16 = arith.truncf %15 : vector<8x128xf32> to vector<8x128xbf16>
    %c0_11 = arith.constant 0 : index
    %c256 = arith.constant 256 : index
    %17 = vector.load %arg1[%c0_11, %c256] : memref<128x384xbf16, #tpu.memory_space<vmem>>, vector<128x128xbf16>
    %cst_12 = arith.constant dense<0.000000e+00> : vector<8x128xf32>
    %18 = tpu.matmul %16, %17, %cst_12 {dimension_numbers = #tpu.dot_dimension_numbers<[1], [0], [0], [1], [0, 0, 1, 1], [], []>} : vector<8x128xbf16>, vector<128x128xbf16>, vector<8x128xf32> -> vector<8x128xf32>
    %c0_13 = arith.constant 0 : index
    %c256_14 = arith.constant 256 : index
    %19 = vector.load %arg2[%c0_13, %c256_14] : memref<1x384xf32, #tpu.memory_space<vmem>>, vector<1x128xf32>
    %20 = vector.broadcast %19 : vector<1x128xf32> to vector<8x128xf32>
    %21 = arith.addf %18, %20 : vector<8x128xf32>
    %22 = vector.extract_strided_slice %21 {offsets = [0, 0], sizes = [8, 37], strides = [1, 1]} : vector<8x128xf32> to vector<8x37xf32>
    %23 = vector.extract_strided_slice %21 {offsets = [0, 37], sizes = [8, 1], strides = [1, 1]} : vector<8x128xf32> to vector<8x1xf32>
    %24 = vector.broadcast %23 : vector<8x1xf32> to vector<8x37xf32>
    %25 = arith.addf %24, %22 : vector<8x37xf32>
    %26 = vector.shape_cast %22 : vector<8x37xf32> to vector<1x8x37xf32>
    %cst_15 = arith.constant dense<0.000000e+00> : vector<1xf32>
    %27 = vector.multi_reduction <add>, %26, %cst_15 [1, 2] : vector<1x8x37xf32> to vector<1xf32>
    %28 = vector.shape_cast %27 : vector<1xf32> to vector<1x1x1xf32>
    %29 = vector.extract %28[0, 0, 0] : f32 from vector<1x1x1xf32>
    %cst_16 = arith.constant 2.960000e+02 : f32
    %30 = arith.divf %29, %cst_16 : f32
    %31 = vector.broadcast %30 : f32 to vector<8x37xf32>
    %32 = arith.subf %25, %31 : vector<8x37xf32>
    %c0_17 = arith.constant 0 : index
    %c0_18 = arith.constant 0 : index
    %33 = vector.load %arg3[%c0_17, %c0_18] : memref<8x37xf32, #tpu.memory_space<vmem>>, vector<8x37xf32>
    tpu.vector_store %arg3[%c0_17, %c0_18], %32 {strides = array<i32>} : memref<8x37xf32, #tpu.memory_space<vmem>>, vector<8x37xf32>,
    return
  }
}

</mosaic_0001>

<bundles_post_ra>
// kernel: tpu_custom_call.1
= control target key start
LH: loop header
LB: loop body
LE: loop exit
PB: predicated region body
PF: predicated region fallthrough
CT: control target
= control target key end

     0   :  { %8 = vsyncpa [#allocation3], 0  ;;  %s712_s0 = inlined_call_operand.hbm [shape: bf16[8,128], index: 0, kind: input, shape index: {}]   ;;  %s713_s1 = inlined_call_operand.hbm [shape: bf16[128,384], index: 1, kind: input, shape index: {}]   ;;  %s714_s2 = inlined_call_operand.vmem [shape: f32[1,384], index: 2, kind: input, shape index: {}]   ;;  %s715_s3 = inlined_call_operand.hbm [shape: f32[8,37], index: 3, kind: output, shape index: {}]  }
   0x1   :  { %9 = vsyncpa [#allocation6], 0 }
   0x2   :  { %10 = vsyncpa [#allocation4], 0  ;;  %s634_s12 = smov [#allocation2]   ;;  %s635_s14 = smov [#allocation5]  }
   0x3   :  { %s17_s13 = sshll.u32 %s634_s12, 4  ;;  %s26_s15 = sshll.u32 %s635_s14, 4  ;;  %s18_s13 = int_to_ptr.vmem [resolvable:$true] %s17_s13  ;;  %s27_s15 = int_to_ptr.vmem [resolvable:$true] %s26_s15 }
   0x4   :  { %s576_s16 = scalar_lea.vmem %s18_s13, 64  ;;  %p581_p1 = scmp.lt.s32.totalorder %s18_s13, %s18_s13 }
   0x5   :  { %p577_p0 = scmp.ne.s32.totalorder %s18_s13, %s576_s16  ;;  %p582_p2 = scmp.lt.s32.totalorder %s576_s16, %s576_s16 }
   0x7   :  { %p583_p3 = por %p582_p2, %p581_p1 }
   0x9   :  { %p584_p4 = pnand %p583_p3, %p577_p0 }
   0xb   :  { %587 = shalt.err (!%p584_p4)
}
   0xc   :  { %20 = dma.hbm_to_vmem [thread:$0]  %s712_s0, 64, %s18_s13, [#allocation3]  }
   0xd   :  { %s596_s19 = scalar_lea.vmem %s27_s15, 3072  ;;  %p601_p6 = scmp.lt.s32.totalorder %s27_s15, %s27_s15 }
   0xe   :  { %p597_p5 = scmp.ne.s32.totalorder %s27_s15, %s596_s19  ;;  %p602_p7 = scmp.lt.s32.totalorder %s596_s19, %s596_s19 }
  0x10   :  { %p603_p8 = por %p602_p7, %p601_p6 }
  0x12   :  { %p604_p9 = pnand %p603_p8, %p597_p5 }
  0x14   :  { %607 = shalt.err (!%p604_p9)
}
  0x15   :  { %s636_s20 = smov 192   ;;  %s637_s21 = smov 12  }
  0x16   :  { %32 = dma.hbm_to_vmem [thread:$0]  %s713_s1, 3072, %s27_s15, [#allocation6], %s636_s20, %s636_s20, %s637_s21  }
  0x17   :  { %628 = dma.done.wait [#allocation3], 64  }
  0x18   :  { %629 = vsyncadd [#allocation3], 4294967232 }
  0x19   :  { %630 = dma.done.wait [#allocation6], 3072  }
  0x1a   :  { %631 = vsyncadd [#allocation6], 4294964224  ;;  %v638_v0 = vmov 0.0   ;;  %vm639_vm0 = vmmov 0   ;;  %v544_v1 = vld [vmem:[#allocation5 + $0xa8] ss:$12 sps:$4 sm:$0xff]  }
  0x1b   :  { %473 = vmatprep.subr.bf16.mxu0 %v638_v0  ;;  %489 = vmatprep.mubr.msk.bf16.mxu0 %vm639_vm0, %v638_v0  ;;  %v545_v2 = vld [vmem:[#allocation5 + $0x90] ss:$12 sps:$4 sm:$0xff]   ;;  %v546_v3 = vld [vmem:[#allocation5 + $0x78] ss:$12 sps:$4 sm:$0xff]   ;;  %v547_v5 = vld [vmem:[#allocation5 + $0x60] ss:$12 sps:$4 sm:$0xff]  }
  0x1c   :  { %493 = vmatprep.subr.bf16.mxu1 %v638_v0  ;;  %509 = vmatprep.mubr.msk.bf16.mxu1 %vm639_vm0, %v638_v0  ;;  %v552_v4 = vld [vmem:[#allocation5 + $0xac] ss:$12 sps:$4 sm:$0xff]   ;;  %v553_v6 = vld [vmem:[#allocation5 + $0x94] ss:$12 sps:$4 sm:$0xff]   ;;  %v554_v8 = vld [vmem:[#allocation5 + $0x7c] ss:$12 sps:$4 sm:$0xff]  }
  0x1d   :  { %474 = vmatpush3.bf16.msra.mxu0 %v544_v1  ;;  %494 = vmatpush3.bf16.msra.mxu1 %v552_v4  ;;  %v548_v7 = vld [vmem:[#allocation5 + $0x48] ss:$12 sps:$4 sm:$0xff]   ;;  %v549_v9 = vld [vmem:[#allocation5 + $0x30] ss:$12 sps:$4 sm:$0xff]   ;;  %v550_v11 = vld [vmem:[#allocation5 + $0x18] ss:$12 sps:$4 sm:$0xff]  }
  0x1e   :  { %475 = vmatprep.subr.bf16.mxu0 %v638_v0  ;;  %495 = vmatprep.subr.bf16.mxu1 %v638_v0  ;;  %v555_v10 = vld [vmem:[#allocation5 + $0x64] ss:$12 sps:$4 sm:$0xff]   ;;  %v556_v12 = vld [vmem:[#allocation5 + $0x4c] ss:$12 sps:$4 sm:$0xff]   ;;  %v557_v14 = vld [vmem:[#allocation5 + $0x34] ss:$12 sps:$4 sm:$0xff]  }
  0x1f   :  { %v551_v13 = vld [vmem:[#allocation5] ss:$12 sps:$4 sm:$0xff]   ;;  %v42_v15 = vld [vmem:[#allocation2] sm:$0xf]  ;;  %v559_v17 = vld [vmem:[#allocation5 + $0x4] ss:$12 sps:$4 sm:$0xff]  }
  0x20   :  { %v558_v16 = vld [vmem:[#allocation5 + $0x1c] ss:$12 sps:$4 sm:$0xff]   ;;  %v561_v19 = vld [vmem:[#allocation5 + $0x98] ss:$12 sps:$4 sm:$0xff]   ;;  %v562_v20 = vld [vmem:[#allocation5 + $0x80] ss:$12 sps:$4 sm:$0xff]  }
  0x21   :  { %476 = vmatpush3.bf16.msra.mxu0 %v545_v2  ;;  %496 = vmatpush3.bf16.msra.mxu1 %v553_v6  ;;  %v560_v18 = vld [vmem:[#allocation5 + $0xb0] ss:$12 sps:$4 sm:$0xff]   ;;  %v563_v21 = vld [vmem:[#allocation5 + $0x68] ss:$12 sps:$4 sm:$0xff]   ;;  %v565_v23 = vld [vmem:[#allocation5 + $0x38] ss:$12 sps:$4 sm:$0xff]  }
  0x22   :  { %477 = vmatprep.subr.bf16.mxu0 %v638_v0  ;;  %497 = vmatprep.subr.bf16.mxu1 %v638_v0  ;;  %v564_v22 = vld [vmem:[#allocation5 + $0x50] ss:$12 sps:$4 sm:$0xff]   ;;  %v566_v32 = vld [vmem:[#allocation5 + $0x20] ss:$12 sps:$4 sm:$0xff]   ;;  %v567_v33 = vld [vmem:[#allocation5 + $0x8] ss:$12 sps:$4 sm:$0xff]  }
  0x23   :  { %v419_v24 = vld [vmem:[%s714_s2] ss:$0 sm:$0xff]  ;;  %v428_v34 = vld [vmem:[%s714_s2 + $0x1] ss:$0 sm:$0xff]  ;;  %v640_v42 = vmov 37   ;;  %vm386_vm1 = vcmask 302080  }
  0x24   :  { %543 = vset.pattern.permute.xlu0 %v640_v42  ;;  %v437_v43 = vld [vmem:[%s714_s2 + $0x2] ss:$0 sm:$0xff]  ;;  %s641_s29 = smov [#allocation7]  }
  0x25   :  { %478 = vmatpush3.bf16.msra.mxu0 %v546_v3  ;;  %498 = vmatpush3.bf16.msra.mxu1 %v554_v8  ;;  %s409_s30 = sshll.u32 %s641_s29, 4  ;;  %s410_s30 = int_to_ptr.vmem [resolvable:$true] %s409_s30 }
  0x26   :  { %479 = vmatprep.subr.bf16.mxu0 %v638_v0  ;;  %499 = vmatprep.subr.bf16.mxu1 %v638_v0  ;;  %s608_s4 = scalar_lea.vmem %s410_s30, 128  ;;  %p613_p11 = scmp.lt.s32.totalorder %s410_s30, %s410_s30 }
  0x27   :  { %p609_p10 = scmp.ne.s32.totalorder %s410_s30, %s608_s4  ;;  %p614_p12 = scmp.lt.s32.totalorder %s608_s4, %s608_s4 }
  0x29   :  { %480 = vmatpush3.bf16.msra.mxu0 %v547_v5  ;;  %500 = vmatpush3.bf16.msra.mxu1 %v555_v10  ;;  %p615_p13 = por %p614_p12, %p613_p11 }
  0x2a   :  { %481 = vmatprep.subr.bf16.mxu0 %v638_v0  ;;  %501 = vmatprep.subr.bf16.mxu1 %v638_v0 }
  0x2b   :  { %p616_p0 = pnand %p615_p13, %p609_p10 }
  0x2d   :  { %482 = vmatpush3.bf16.msra.mxu0 %v548_v7  ;;  %502 = vmatpush3.bf16.msra.mxu1 %v556_v12 }
  0x2e   :  { %483 = vmatprep.subr.bf16.mxu0 %v638_v0  ;;  %503 = vmatprep.subr.bf16.mxu1 %v638_v0 }
  0x31   :  { %484 = vmatpush3.bf16.msra.mxu0 %v549_v9  ;;  %504 = vmatpush3.bf16.msra.mxu1 %v557_v14 }
  0x32   :  { %485 = vmatprep.subr.bf16.mxu0 %v638_v0  ;;  %505 = vmatprep.subr.bf16.mxu1 %v638_v0 }
  0x35   :  { %486 = vmatpush3.bf16.msra.mxu0 %v550_v11  ;;  %506 = vmatpush3.bf16.msra.mxu1 %v558_v16 }
  0x36   :  { %487 = vmatprep.subr.bf16.mxu0 %v638_v0  ;;  %507 = vmatprep.subr.bf16.mxu1 %v638_v0 }
  0x39   :  { %488 = vmatpush3.bf16.msra.mxu0 %v551_v13  ;;  %508 = vmatpush3.bf16.msra.mxu1 %v559_v17 }
  0x3a   :  { %513 = vmatprep.subr.bf16.mxu0 %v638_v0 }
  0x3c   :  { %490 = vmatmul.mubr.bf16.vlgmr.msra.gmra.mxu0 %v42_v15 }
  0x3d   :  { %529 = vmatprep.mubr.msk.bf16.mxu0 %vm639_vm0, %v638_v0  ;;  %514 = vmatpush3.bf16.msra.mxu0 %v560_v18 }
  0x3e   :  { %515 = vmatprep.subr.bf16.mxu0 %v638_v0 }
  0x41   :  { %516 = vmatpush3.bf16.msra.mxu0 %v561_v19 }
  0x42   :  { %517 = vmatprep.subr.bf16.mxu0 %v638_v0 }
  0x45   :  { %518 = vmatpush3.bf16.msra.mxu0 %v562_v20 }
  0x46   :  { %519 = vmatprep.subr.bf16.mxu0 %v638_v0 }
  0x49   :  { %520 = vmatpush3.bf16.msra.mxu0 %v563_v21 }
  0x4a   :  { %521 = vmatprep.subr.bf16.mxu0 %v638_v0 }
  0x4d   :  { %522 = vmatpush3.bf16.msra.mxu0 %v564_v22 }
  0x4e   :  { %523 = vmatprep.subr.bf16.mxu0 %v638_v0 }
  0x51   :  { %524 = vmatpush3.bf16.msra.mxu0 %v565_v23 }
  0x52   :  { %525 = vmatprep.subr.bf16.mxu0 %v638_v0 }
  0x55   :  { %526 = vmatpush3.bf16.msra.mxu0 %v566_v32 }
  0x56   :  { %527 = vmatprep.subr.bf16.mxu0 %v638_v0 }
  0x59   :  { %528 = vmatpush3.bf16.msra.mxu0 %v567_v33 }
  0xfc   :  { %v148_v25 = vpop.f32.mrf.mxu0 }
  0xfd   :  { %v149_v26 = vadd.f32 %v419_v24, %v148_v25 }
  0xfe   :  { %v491_v27 = vpop.f32.mrf.mxu0 }
  0xff   :  { %v154_v28 = vmax.f32 %v149_v26, 0.0 }
 0x100   :  { %v151_v29 = vpop.f32.mrf.mxu0 }
 0x101   :  { %v155_v30 = vpack.c.bf16 %v154_v28, %v154_v28 }
 0x102   :  { %v492_v31 = vpop.f32.mrf.mxu0 }
 0x103   :  { %510 = vmatmul.mubr.bf16.vlgmr.msra.gmra.mxu1 %v155_v30 }
 0x1c3   :  { %v261_v35 = vpop.f32.mrf.mxu1 }
 0x1c4   :  { %v262_v36 = vadd.f32 %v428_v34, %v261_v35 }
 0x1c5   :  { %v511_v37 = vpop.f32.mrf.mxu1 }
 0x1c6   :  { %v267_v38 = vmax.f32 %v262_v36, 0.0 }
 0x1c7   :  { %v264_v39 = vpop.f32.mrf.mxu1 }
 0x1c8   :  { %v268_v40 = vpack.c.bf16 %v267_v38, %v267_v38 }
 0x1c9   :  { %v512_v41 = vpop.f32.mrf.mxu1 }
 0x1ca   :  { %530 = vmatmul.mubr.bf16.vlgmr.msra.gmra.mxu0 %v268_v40 }
 0x28a   :  { %v374_v44 = vpop.f32.mrf.mxu0 }
 0x28b   :  { %v375_v45 = vadd.f32 %v437_v43, %v374_v44 }
 0x28c   :  { %v531_v46 = vpop.f32.mrf.mxu0 }
 0x28d   :  { %v387_v47 = vsel %vm386_vm1, %v375_v45, 0.0 }
 0x28e   :  { %388 = vadd.xlane.f32.xlu0 %v387_v47  ;;  %v377_v48 = vpop.f32.mrf.mxu0 }
 0x290   :  { %v532_v49 = vpop.f32.mrf.mxu0 }
 0x2a4   :  { %382 = vperm.xlu0 %543, %v375_v45  }
 0x317   :  { %v389_v50 = vpop.xlane.xlu0 %388 }
 0x318   :  { %v390_v51 = vrot.slane %v389_v50, 4 }
 0x31a   :  { %v391_v52 = vadd.f32 %v390_v51, %v389_v50 }
 0x31c   :  { %v392_v53 = vrot.slane %v391_v52, 2 }
 0x31e   :  { %v393_v54 = vadd.f32 %v392_v53, %v391_v52 }
 0x31f   :  { %v383_v57 = vpop.permute.xlu0 %382 }
 0x320   :  { %v394_v55 = vrot.slane %v393_v54, 1  ;;  %v385_v58 = vadd.f32 %v383_v57, %v375_v45 }
 0x322   :  { %v395_v56 = vadd.f32 %v394_v55, %v393_v54 }
 0x324   :  { %533 = vpush %v395_v56 }
 0x355   :  { %s534_s2 = spop %533 }
 0x356   :  { %s399_s28 = smul.f32 0.0033783785, %s534_s2 }
 0x358   :  { %v400_v59 = vstv %s399_s28 }
 0x359   :  { %v401_v60 = vsub.f32 %v385_v58, %v400_v59 }
 0x35b   :  { %402 = vst.msk [vmem:[#allocation7] sm:$0xff] %vm386_vm1, %v401_v60 }
 0x35c   :  { %619 = shalt.err (!%p616_p0)
}
 0x35d   :  { %412 = dma.vmem_to_hbm [thread:$0]  %s410_s30, 128, %s715_s3, [#allocation4]  }
 0x35e   :  { %632 = dma.done.wait [#allocation4], 128  }
 0x35f   :  { %633 = vsyncadd [#allocation4], 4294967168 }
 0x360   :  { %416 = vsyncpa [#allocation3], 1 }
 0x361   :  { %417 = vsyncpa [#allocation6], 1 }
 0x362   :  { %418 = vsyncpa [#allocation4], 1 }

</bundles_post_ra>
